<compile_context>
chip_gen: v6e
topology: v6e:2x2x1
jax: 0.10.0
libtpu: 0.0.40
codegen_flags: <defaults>
</compile_context>

<pallas_src>
import functools

import numpy as np
import jax
import jax.numpy as jnp
from jax import lax
from jax.experimental import pallas as pl
from jax.experimental.pallas import tpu as pltpu

MAXDIM = 1
N_BINS = 100

# Python floats (NOT jnp arrays) so they become jaxpr literals.
F32_MAX = float(np.finfo(np.float32).max)
F32_MIN = float(np.finfo(np.float32).min)


def _nan_to_num(x, posinf, neginf):
    # Mirrors torch.nan_to_num: nan -> 0, +inf -> posinf, -inf -> neginf.
    # (Matching torch semantics exactly: extreme sentinels can make
    # gmax - gmin overflow, exactly as torch.linspace would.)
    x = jnp.where(jnp.isnan(x), 0.0, x)
    x = jnp.where(x == jnp.inf, posinf, x)
    x = jnp.where(x == -jnp.inf, neginf, x)
    return x


# ----------------------------------------------------------------------------
# Pallas kernel: fused Betti curves (X & Y) + squared-difference loss
# ----------------------------------------------------------------------------
def _betti_loss_kernel(data_ref, o_ref, *, rows, n_bins, n_bins_pad):
    # data_ref: (4*rows, n_pts) f32, packed as [bX; bY; dX; dY].
    R2 = 2 * rows

    # Fused births / deaths for both diagrams: first `rows` rows are X,
    # next `rows` rows are Y.  torch.nan_to_num defaults for births,
    # posinf=0 for deaths.
    b = _nan_to_num(data_ref[0:R2, :], F32_MAX, F32_MIN)        # (R2, N)
    d = _nan_to_num(data_ref[R2:2 * R2, :], 0.0, F32_MIN)       # (R2, N)

    # Per-diagram global min of births / max of deaths (torch .min()/.max()).
    gmin_x = jnp.min(b[:rows], keepdims=True)                   # (1, 1)
    gmax_x = jnp.max(d[:rows], keepdims=True)
    gmin_y = jnp.min(b[rows:], keepdims=True)
    gmax_y = jnp.max(d[rows:], keepdims=True)

    row_idx = lax.broadcasted_iota(jnp.int32, (R2, 1), 0)
    is_x = row_idx < rows
    gmin = jnp.where(is_x, gmin_x, gmin_y)                      # (R2, 1)
    gmax = jnp.where(is_x, gmax_x, gmax_y)                      # (R2, 1)

    # linspace(gmin, gmax, n_bins): exact-endpoint fractions in [0, 1]
    # (true division so frac[n_bins-1] == 1.0 and the last step == gmax).
    bin_idx = lax.broadcasted_iota(jnp.int32, (1, n_bins_pad), 1)
    frac = bin_idx.astype(jnp.float32) / float(n_bins - 1)
    steps = gmin + (gmax - gmin) * frac                         # (R2, n_bins_pad)

    # Vectorized indicator: points on sublanes, bins on lanes.  One compare
    # pair + one sublane-axis reduce replaces the old unrolled per-point loop.
    alive = jnp.logical_and(b[:, :, None] <= steps[:, None, :],
                            d[:, :, None] > steps[:, None, :])  # (R2, N, nbp)
    curves = jnp.sum(alive.astype(jnp.float32), axis=1)         # (R2, n_bins_pad)

    # Squared-difference loss over valid bins only (padded bins masked).
    valid = bin_idx < n_bins
    diff = jnp.where(valid, curves[:rows] - curves[rows:], 0.0)  # (rows, nbp)
    o_ref[...] = jnp.sum(diff * diff, keepdims=True)


def betti_curve_loss_from_diagrams(bX, dX, bY, dY, n_bins=N_BINS):
    B, D, N = bX.shape
    rows = B * D
    n_bins_pad = ((n_bins + 127) // 128) * 128   # pad bins to full lane width
    flat = lambda t: jnp.asarray(t, jnp.float32).reshape(rows, N)
    # Flat 2-D pack [bX; bY; dX; dY] -> one DMA, one (sublane x lane) tile pair.
    packed = jnp.concatenate([flat(bX), flat(bY), flat(dX), flat(dY)], axis=0)
    kernel = functools.partial(_betti_loss_kernel, rows=rows,
                               n_bins=n_bins, n_bins_pad=n_bins_pad)
    out = pl.pallas_call(
        kernel,
        out_shape=jax.ShapeDtypeStruct((1, 1), jnp.float32),
        in_specs=[pl.BlockSpec(memory_space=pltpu.MemorySpace.VMEM)],
        out_specs=pl.BlockSpec(memory_space=pltpu.MemorySpace.VMEM),
    )(packed)
    return out[0, 0]


# ----------------------------------------------------------------------------
# Plain-JAX glue: deterministic Vietoris-Rips surrogate (see TODO at top)
# ----------------------------------------------------------------------------
def surrogate_vietoris_rips(points, maxdim=MAXDIM):
    """points: (B, N, dim) -> (births, deaths), each (B, maxdim+1, N)."""
    diff = points[:, :, None, :] - points[:, None, :, :]
    dist = jnp.sqrt(jnp.sum(diff * diff, axis=-1))
    n = dist.shape[1]
    offdiag = jnp.where(jnp.eye(n, dtype=bool)[None], jnp.inf, dist)
    sorted_d = jnp.sort(offdiag, axis=-1)
    nn1 = sorted_d[..., 0]  # nearest-neighbor distance
    nn2 = sorted_d[..., 1]  # second-nearest distance

    births, deaths = [], []
    # H0-like bars: born at 0, die at NN distance; one infinite bar (posinf=0)
    b0 = jnp.zeros_like(nn1)
    d0 = nn1.at[:, 0].set(jnp.inf)
    births.append(b0)
    deaths.append(d0)
    # Higher-dim bars: NN -> 2nd-NN, with NaN padding (nan_to_num path)
    for _ in range(1, maxdim + 1):
        bk = nn1.at[:, 0].set(jnp.nan)
        dk = nn2.at[:, 0].set(jnp.nan)
        births.append(bk)
        deaths.append(dk)
    return jnp.stack(births, axis=1), jnp.stack(deaths, axis=1)


def betti_curve_loss_forward(X, Y, maxdim=MAXDIM, n_bins=N_BINS):
    bX, dX = surrogate_vietoris_rips(X, maxdim)
    bY, dY = surrogate_vietoris_rips(Y, maxdim)
    return betti_curve_loss_from_diagrams(bX, dX, bY, dY, n_bins)


# ----------------------------------------------------------------------------
# Pure-JAX reference of the curves/loss math (mirrors the torch code)
# ----------------------------------------------------------------------------
def _curves_ref(b, d, n_bins):
    b = jnp.nan_to_num(b)
    d = jnp.nan_to_num(d, posinf=0.0)
    gmin, gmax = jnp.min(b), jnp.max(d)
    # Same step formula as the kernel (exact 1.0 endpoint) for exact agreement.
    frac = jnp.arange(n_bins, dtype=jnp.float32) / float(n_bins - 1)
    steps = gmin + (gmax - gmin) * frac
    s = steps.reshape(1, 1, -1, 1)
    return ((b[:, :, None, :] <= s) & (d[:, :, None, :] > s)).sum(axis=-1)


def _loss_ref(X, Y, maxdim=MAXDIM, n_bins=N_BINS):
    bX, dX = surrogate_vietoris_rips(X, maxdim)
    bY, dY = surrogate_vietoris_rips(Y, maxdim)
    cX = _curves_ref(bX.astype(jnp.float32), dX.astype(jnp.float32), n_bins)
    cY = _curves_ref(bY.astype(jnp.float32), dY.astype(jnp.float32), n_bins)
    return jnp.sum(jnp.square(cX - cY))


if __name__ == "__main__":
    key = jax.random.PRNGKey(0)
    kx, ky = jax.random.split(key)
    # Small point clouds: batch=2, n_points=32, spatial dim=3
    X = jax.random.normal(kx, (2, 32, 3), dtype=jnp.float32)
    Y = jax.random.normal(ky, (2, 32, 3), dtype=jnp.float32)

    loss = betti_curve_loss_forward(X, Y)
    loss = jax.block_until_ready(loss)

    ref = int(_loss_ref(X, Y))
    assert int(round(float(loss))) == ref, f"mismatch: kernel={float(loss)} ref={ref}"
    print("KERNEL_OK")
</pallas_src>

<mosaic_0001>
module attributes {stable_mosaic.version = 11 : i64} {
  func.func @_betti_loss_kernel(%arg0: memref<16x32xf32, #tpu.memory_space<vmem>>, %arg1: memref<1x1xf32, #tpu.memory_space<vmem>>) attributes {dimension_semantics = [], scalar_prefetch = 0 : i64, scratch_operands = 0 : i64, tpu.core_type = #tpu.core_type<tc>} {
    %c0 = arith.constant 0 : index
    %c0_0 = arith.constant 0 : index
    %0 = vector.load %arg0[%c0, %c0_0] : memref<16x32xf32, #tpu.memory_space<vmem>>, vector<8x32xf32>
    %1 = arith.cmpf one, %0, %0 : vector<8x32xf32>
    %cst = arith.constant 0.000000e+00 : f32
    %2 = vector.broadcast %cst : f32 to vector<8x32xf32>
    %3 = arith.select %1, %2, %0 : vector<8x32xi1>, vector<8x32xf32>
    %cst_1 = arith.constant 0x7F800000 : f32
    %4 = vector.broadcast %cst_1 : f32 to vector<8x32xf32>
    %5 = arith.cmpf oeq, %3, %4 : vector<8x32xf32>
    %cst_2 = arith.constant 3.40282347E+38 : f32
    %6 = vector.broadcast %cst_2 : f32 to vector<8x32xf32>
    %7 = arith.select %5, %6, %3 : vector<8x32xi1>, vector<8x32xf32>
    %cst_3 = arith.constant 0xFF800000 : f32
    %8 = vector.broadcast %cst_3 : f32 to vector<8x32xf32>
    %9 = arith.cmpf oeq, %7, %8 : vector<8x32xf32>
    %cst_4 = arith.constant -3.40282347E+38 : f32
    %10 = vector.broadcast %cst_4 : f32 to vector<8x32xf32>
    %11 = arith.select %9, %10, %7 : vector<8x32xi1>, vector<8x32xf32>
    %c8 = arith.constant 8 : index
    %c0_5 = arith.constant 0 : index
    %12 = vector.load %arg0[%c8, %c0_5] : memref<16x32xf32, #tpu.memory_space<vmem>>, vector<8x32xf32>
    %13 = arith.cmpf one, %12, %12 : vector<8x32xf32>
    %cst_6 = arith.constant 0.000000e+00 : f32
    %14 = vector.broadcast %cst_6 : f32 to vector<8x32xf32>
    %15 = arith.select %13, %14, %12 : vector<8x32xi1>, vector<8x32xf32>
    %cst_7 = arith.constant 0x7F800000 : f32
    %16 = vector.broadcast %cst_7 : f32 to vector<8x32xf32>
    %17 = arith.cmpf oeq, %15, %16 : vector<8x32xf32>
    %cst_8 = arith.constant 0.000000e+00 : f32
    %18 = vector.broadcast %cst_8 : f32 to vector<8x32xf32>
    %19 = arith.select %17, %18, %15 : vector<8x32xi1>, vector<8x32xf32>
    %cst_9 = arith.constant 0xFF800000 : f32
    %20 = vector.broadcast %cst_9 : f32 to vector<8x32xf32>
    %21 = arith.cmpf oeq, %19, %20 : vector<8x32xf32>
    %cst_10 = arith.constant -3.40282347E+38 : f32
    %22 = vector.broadcast %cst_10 : f32 to vector<8x32xf32>
    %23 = arith.select %21, %22, %19 : vector<8x32xi1>, vector<8x32xf32>
    %24 = vector.extract_strided_slice %11 {offsets = [0, 0], sizes = [4, 32], strides = [1, 1]} : vector<8x32xf32> to vector<4x32xf32>
    %25 = vector.shape_cast %24 : vector<4x32xf32> to vector<1x4x32xf32>
    %cst_11 = arith.constant dense<0x7F800000> : vector<1xf32>
    %26 = vector.multi_reduction <minimumf>, %25, %cst_11 [1, 2] : vector<1x4x32xf32> to vector<1xf32>
    %27 = vector.shape_cast %26 : vector<1xf32> to vector<1x1x1xf32>
    %28 = vector.extract %27[0, 0, 0] : f32 from vector<1x1x1xf32>
    %29 = vector.broadcast %28 : f32 to vector<1x1xf32>
    %30 = vector.extract_strided_slice %23 {offsets = [0, 0], sizes = [4, 32], strides = [1, 1]} : vector<8x32xf32> to vector<4x32xf32>
    %31 = vector.shape_cast %30 : vector<4x32xf32> to vector<1x4x32xf32>
    %cst_12 = arith.constant dense<0xFF800000> : vector<1xf32>
    %32 = vector.multi_reduction <maximumf>, %31, %cst_12 [1, 2] : vector<1x4x32xf32> to vector<1xf32>
    %33 = vector.shape_cast %32 : vector<1xf32> to vector<1x1x1xf32>
    %34 = vector.extract %33[0, 0, 0] : f32 from vector<1x1x1xf32>
    %35 = vector.broadcast %34 : f32 to vector<1x1xf32>
    %36 = vector.extract_strided_slice %11 {offsets = [4, 0], sizes = [4, 32], strides = [1, 1]} : vector<8x32xf32> to vector<4x32xf32>
    %37 = vector.shape_cast %36 : vector<4x32xf32> to vector<1x4x32xf32>
    %cst_13 = arith.constant dense<0x7F800000> : vector<1xf32>
    %38 = vector.multi_reduction <minimumf>, %37, %cst_13 [1, 2] : vector<1x4x32xf32> to vector<1xf32>
    %39 = vector.shape_cast %38 : vector<1xf32> to vector<1x1x1xf32>
    %40 = vector.extract %39[0, 0, 0] : f32 from vector<1x1x1xf32>
    %41 = vector.broadcast %40 : f32 to vector<1x1xf32>
    %42 = vector.extract_strided_slice %23 {offsets = [4, 0], sizes = [4, 32], strides = [1, 1]} : vector<8x32xf32> to vector<4x32xf32>
    %43 = vector.shape_cast %42 : vector<4x32xf32> to vector<1x4x32xf32>
    %cst_14 = arith.constant dense<0xFF800000> : vector<1xf32>
    %44 = vector.multi_reduction <maximumf>, %43, %cst_14 [1, 2] : vector<1x4x32xf32> to vector<1xf32>
    %45 = vector.shape_cast %44 : vector<1xf32> to vector<1x1x1xf32>
    %46 = vector.extract %45[0, 0, 0] : f32 from vector<1x1x1xf32>
    %47 = vector.broadcast %46 : f32 to vector<1x1xf32>
    %48 = tpu.iota {dimensions = array<i32: 0>} : vector<8x1xi32>
    %c4_i32 = arith.constant 4 : i32
    %49 = vector.broadcast %c4_i32 : i32 to vector<8x1xi32>
    %50 = arith.cmpi slt, %48, %49 : vector<8x1xi32>
    %51 = vector.shape_cast %29 : vector<1x1xf32> to vector<1x1xf32>
    %52 = vector.broadcast %51 : vector<1x1xf32> to vector<8x1xf32>
    %53 = vector.shape_cast %41 : vector<1x1xf32> to vector<1x1xf32>
    %54 = vector.broadcast %53 : vector<1x1xf32> to vector<8x1xf32>
    %55 = arith.select %50, %52, %54 : vector<8x1xi1>, vector<8x1xf32>
    %56 = vector.shape_cast %35 : vector<1x1xf32> to vector<1x1xf32>
    %57 = vector.broadcast %56 : vector<1x1xf32> to vector<8x1xf32>
    %58 = vector.shape_cast %47 : vector<1x1xf32> to vector<1x1xf32>
    %59 = vector.broadcast %58 : vector<1x1xf32> to vector<8x1xf32>
    %60 = arith.select %50, %57, %59 : vector<8x1xi1>, vector<8x1xf32>
    %61 = tpu.iota {dimensions = array<i32: 1>} : vector<1x128xi32>
    %62 = arith.sitofp %61 : vector<1x128xi32> to vector<1x128xf32>
    %cst_15 = arith.constant 9.900000e+01 : f32
    %63 = vector.broadcast %cst_15 : f32 to vector<1x128xf32>
    %64 = arith.divf %62, %63 : vector<1x128xf32>
    %65 = arith.subf %60, %55 : vector<8x1xf32>
    %66 = vector.broadcast %65 : vector<8x1xf32> to vector<8x128xf32>
    %67 = vector.broadcast %64 : vector<1x128xf32> to vector<8x128xf32>
    %68 = arith.mulf %66, %67 : vector<8x128xf32>
    %69 = vector.broadcast %55 : vector<8x1xf32> to vector<8x128xf32>
    %70 = arith.addf %69, %68 : vector<8x128xf32>
    %71 = vector.shape_cast %11 : vector<8x32xf32> to vector<8x32x1xf32>
    %72 = vector.shape_cast %70 : vector<8x128xf32> to vector<8x1x128xf32>
    %73 = vector.broadcast %71 : vector<8x32x1xf32> to vector<8x32x128xf32>
    %74 = vector.broadcast %72 : vector<8x1x128xf32> to vector<8x32x128xf32>
    %75 = arith.cmpf ole, %73, %74 : vector<8x32x128xf32>
    %76 = vector.shape_cast %23 : vector<8x32xf32> to vector<8x32x1xf32>
    %77 = vector.shape_cast %70 : vector<8x128xf32> to vector<8x1x128xf32>
    %78 = vector.broadcast %76 : vector<8x32x1xf32> to vector<8x32x128xf32>
    %79 = vector.broadcast %77 : vector<8x1x128xf32> to vector<8x32x128xf32>
    %80 = arith.cmpf ogt, %78, %79 : vector<8x32x128xf32>
    %81 = arith.andi %75, %80 : vector<8x32x128xi1>
    %82 = arith.extui %81 : vector<8x32x128xi1> to vector<8x32x128xi32>
    %83 = arith.sitofp %82 : vector<8x32x128xi32> to vector<8x32x128xf32>
    %cst_16 = arith.constant dense<0.000000e+00> : vector<8x128xf32>
    %84 = vector.multi_reduction <add>, %83, %cst_16 [1] : vector<8x32x128xf32> to vector<8x128xf32>
    %c100_i32 = arith.constant 100 : i32
    %85 = vector.broadcast %c100_i32 : i32 to vector<1x128xi32>
    %86 = arith.cmpi slt, %61, %85 : vector<1x128xi32>
    %87 = vector.extract_strided_slice %84 {offsets = [0, 0], sizes = [4, 128], strides = [1, 1]} : vector<8x128xf32> to vector<4x128xf32>
    %88 = vector.extract_strided_slice %84 {offsets = [4, 0], sizes = [4, 128], strides = [1, 1]} : vector<8x128xf32> to vector<4x128xf32>
    %89 = arith.subf %87, %88 : vector<4x128xf32>
    %cst_17 = arith.constant 0.000000e+00 : f32
    %90 = vector.shape_cast %86 : vector<1x128xi1> to vector<1x128xi1>
    %91 = vector.broadcast %90 : vector<1x128xi1> to vector<4x128xi1>
    %92 = vector.broadcast %cst_17 : f32 to vector<4x128xf32>
    %93 = arith.select %91, %89, %92 : vector<4x128xi1>, vector<4x128xf32>
    %94 = arith.mulf %93, %93 : vector<4x128xf32>
    %95 = vector.shape_cast %94 : vector<4x128xf32> to vector<1x4x128xf32>
    %cst_18 = arith.constant dense<0.000000e+00> : vector<1xf32>
    %96 = vector.multi_reduction <add>, %95, %cst_18 [1, 2] : vector<1x4x128xf32> to vector<1xf32>
    %97 = vector.shape_cast %96 : vector<1xf32> to vector<1x1x1xf32>
    %98 = vector.extract %97[0, 0, 0] : f32 from vector<1x1x1xf32>
    %99 = vector.broadcast %98 : f32 to vector<1x1xf32>
    %c0_19 = arith.constant 0 : index
    %c0_20 = arith.constant 0 : index
    %100 = vector.load %arg1[%c0_19, %c0_20] : memref<1x1xf32, #tpu.memory_space<vmem>>, vector<1x1xf32>
    tpu.vector_store %arg1[%c0_19, %c0_20], %99 {strides = array<i32>} : memref<1x1xf32, #tpu.memory_space<vmem>>, vector<1x1xf32>,
    return
  }
}

</mosaic_0001>

<bundles_post_ra>
// kernel: tpu_custom_call.1
= control target key start
LH: loop header
LB: loop body
LE: loop exit
PB: predicated region body
PF: predicated region fallthrough
CT: control target
= control target key end

     0   :  { %6 = vsyncpa [#allocation3], 0  ;;  %s1264_s0 = inlined_call_operand.hbm [shape: f32[16,32], index: 0, kind: input, shape index: {}]   ;;  %s1265_s1 = inlined_call_operand.hbm [shape: f32[1,1], index: 1, kind: output, shape index: {}]  }
   0x1   :  { %7 = vsyncpa [#allocation4], 0  ;;  %s863_s6 = smov [#allocation2]  }
   0x2   :  { %s13_s7 = sshll.u32 %s863_s6, 4  ;;  %s14_s7 = int_to_ptr.vmem [resolvable:$true] %s13_s7 }
   0x3   :  { %s827_s8 = scalar_lea.vmem %s14_s7, 256  ;;  %p832_p1 = scmp.lt.s32.totalorder %s14_s7, %s14_s7 }
   0x4   :  { %p828_p0 = scmp.ne.s32.totalorder %s14_s7, %s827_s8  ;;  %p833_p2 = scmp.lt.s32.totalorder %s827_s8, %s827_s8 }
   0x6   :  { %p834_p3 = por %p833_p2, %p832_p1 }
   0x8   :  { %p835_p4 = pnand %p834_p3, %p828_p0 }
   0xa   :  { %838 = shalt.err (!%p835_p4)
}
   0xb   :  { %s864_s9 = smov 128   ;;  %s865_s10 = smov 8  }
   0xc   :  { %19 = dma.hbm_to_vmem [thread:$0]  %s1264_s0, 256, %s14_s7, [#allocation3], %s864_s9, %s864_s9, %s865_s10  }
   0xd   :  { %859 = dma.done.wait [#allocation3], 256  }
   0xe   :  { %860 = vsyncadd [#allocation3], 4294967040  ;;  %v23_v0 = vld [vmem:[#allocation2] sm:$0xff]  ;;  %v30_v1 = vld [vmem:[#allocation2 + $0x8] sm:$0xff]  ;;  %vm58_vm4 = vcmask 261124   ;;  %vm37_vm5 = vcmask 257024   ;;  %v79_v12 = vlaneseq }
   0xf   :  { %vm24_vm0 = vcmp.ne.f32.partialorder %v23_v0, %v23_v0  ;;  %vm31_vm1 = vcmp.ne.f32.partialorder %v30_v1, %v30_v1  ;;  %s868_s16 = smov [#allocation5]  }
  0x10   :  { %v25_v2 = vsel %vm24_vm0, 0.0, %v23_v0  ;;  %v32_v3 = vsel %vm31_vm1, 0.0, %v30_v1  ;;  %v887_v13 = vshrl.u32 %v79_v12, 7  ;;  %s762_s17 = sshll.u32 %s868_s16, 4  ;;  %s763_s17 = int_to_ptr.vmem [resolvable:$true] %s762_s17 }
  0x11   :  { %vm26_vm2 = vcmp.eq.f32.partialorder %v25_v2, inf  ;;  %vm33_vm3 = vcmp.eq.f32.partialorder %v32_v3, inf  ;;  %s839_s19 = scalar_lea.vmem %s763_s17, 16  ;;  %s843_s20 = scalar_lea.vmem %s763_s17, 32 }
  0x12   :  { %v27_v4 = vsel %vm26_vm2, 3.4028235e+38, %v25_v2  ;;  %v34_v5 = vsel %vm33_vm3, 0.0, %v32_v3  ;;  %v890_v14 = vsub.s32 0, %v887_v13  ;;  %v117_v16 = vsub.s32 1, %v887_v13  ;;  %p840_p5 = scmp.ne.s32.totalorder %s763_s17, %s839_s19  ;;  %p844_p6 = scmp.lt.s32.totalorder %s763_s17, %s763_s17 }
  0x13   :  { %vm28_vm6 = vcmp.eq.f32.partialorder %v27_v4, -inf  ;;  %vm35_vm7 = vcmp.eq.f32.partialorder %v34_v5, -inf  ;;  %v174_v18 = vsub.s32 4, %v887_v13  ;;  %v193_v20 = vsub.s32 5, %v887_v13  ;;  %p845_p7 = scmp.lt.s32.totalorder %s843_s20, %s839_s19 }
  0x14   :  { %v29_v6 = vsel %vm28_vm6, -3.4028235e+38, %v27_v4  ;;  %v882_v7 = vsel %vm35_vm7, -3.4028235e+38, %v34_v5  ;;  %v136_v26 = vsub.s32 2, %v887_v13  ;;  %v212_v28 = vsub.s32 6, %v887_v13 }
  0x15   :  { %v59_v8 = vsel %vm58_vm4, %v29_v6, inf  ;;  %v38_v9 = vsel %vm37_vm5, %v29_v6, inf  ;;  %v69_v10 = vsel %vm58_vm4, %v882_v7, -inf  ;;  %v48_v11 = vsel %vm37_vm5, %v882_v7, -inf  ;;  %p846_p8 = por %p845_p7, %p844_p6 }
  0x16   :  { %60 = vmin.xlane.f32.xlu1 %v59_v8  ;;  %39 = vmin.xlane.f32.xlu0 %v38_v9  ;;  %v893_v15 = vrot.slane %v29_v6, %v890_v14  ;;  %v897_v17 = vrot.slane %v29_v6, %v117_v16  ;;  %v175_v19 = vrot.slane %v29_v6, %v174_v18  ;;  %v155_v32 = vsub.s32 3, %v887_v13 }
  0x17   :  { %v194_v21 = vrot.slane %v29_v6, %v193_v20  ;;  %v373_v22 = vrot.slane %v882_v7, %v890_v14  ;;  %v392_v23 = vrot.slane %v882_v7, %v117_v16  ;;  %v449_v24 = vrot.slane %v882_v7, %v174_v18  ;;  %p847_p9 = pnand %p846_p8, %p840_p5 }
  0x18   :  { %v468_v25 = vrot.slane %v882_v7, %v193_v20  ;;  %v137_v27 = vrot.slane %v29_v6, %v136_v26  ;;  %v213_v29 = vrot.slane %v29_v6, %v212_v28  ;;  %v411_v30 = vrot.slane %v882_v7, %v136_v26 }
  0x19   :  { %v487_v31 = vrot.slane %v882_v7, %v212_v28  ;;  %v156_v33 = vrot.slane %v29_v6, %v155_v32  ;;  %v231_v34 = vsub.s32 7, %v887_v13  ;;  %v430_v36 = vrot.slane %v882_v7, %v155_v32 }
  0x1a   :  { %70 = vmax.xlane.f32.xlu1 %v69_v10  ;;  %49 = vmax.xlane.f32.xlu0 %v48_v11  ;;  %vm81_vm8 = vcmp.lt.s32.totalorder %v887_v13, 4 }
  0x1b   :  { %v232_v35 = vrot.slane %v29_v6, %v231_v34  ;;  %v506_v37 = vrot.slane %v882_v7, %v231_v34 }
  0x2b   :  { %105 = vbcast.lane.b32.xlu1 %v893_v15, 264 }
  0x2f   :  { %120 = vbcast.lane.b32.xlu1 %v897_v17, 256 }
  0x30   :  { %101 = vbcast.lane.b32.xlu0 %v893_v15, 256 }
  0x33   :  { %124 = vbcast.lane.b32.xlu1 %v897_v17, 264 }
  0x34   :  { %177 = vbcast.lane.b32.xlu0 %v175_v19, 256 }
  0x37   :  { %181 = vbcast.lane.b32.xlu1 %v175_v19, 264 }
  0x38   :  { %196 = vbcast.lane.b32.xlu0 %v194_v21, 256 }
  0x3b   :  { %200 = vbcast.lane.b32.xlu1 %v194_v21, 264 }
  0x3c   :  { %375 = vbcast.lane.b32.xlu0 %v373_v22, 256 }
  0x3f   :  { %379 = vbcast.lane.b32.xlu1 %v373_v22, 264 }
  0x40   :  { %394 = vbcast.lane.b32.xlu0 %v392_v23, 256 }
  0x43   :  { %398 = vbcast.lane.b32.xlu1 %v392_v23, 264 }
  0x44   :  { %451 = vbcast.lane.b32.xlu0 %v449_v24, 256 }
  0x47   :  { %455 = vbcast.lane.b32.xlu1 %v449_v24, 264 }
  0x48   :  { %470 = vbcast.lane.b32.xlu0 %v468_v25, 256 }
  0x4b   :  { %474 = vbcast.lane.b32.xlu1 %v468_v25, 264 }
  0x4c   :  { %139 = vbcast.lane.b32.xlu0 %v137_v27, 256 }
  0x4f   :  { %143 = vbcast.lane.b32.xlu1 %v137_v27, 264 }
  0x50   :  { %215 = vbcast.lane.b32.xlu0 %v213_v29, 256 }
  0x53   :  { %219 = vbcast.lane.b32.xlu1 %v213_v29, 264 }
  0x54   :  { %413 = vbcast.lane.b32.xlu0 %v411_v30, 256 }
  0x57   :  { %417 = vbcast.lane.b32.xlu1 %v411_v30, 264 }
  0x58   :  { %489 = vbcast.lane.b32.xlu0 %v487_v31, 256 }
  0x5b   :  { %493 = vbcast.lane.b32.xlu1 %v487_v31, 264 }
  0x5c   :  { %109 = vbcast.lane.b32.xlu0 %v893_v15, 272 }
  0x5f   :  { %128 = vbcast.lane.b32.xlu1 %v897_v17, 272 }
  0x60   :  { %158 = vbcast.lane.b32.xlu0 %v156_v33, 256 }
  0x63   :  { %162 = vbcast.lane.b32.xlu1 %v156_v33, 264 }
  0x64   :  { %185 = vbcast.lane.b32.xlu0 %v175_v19, 272 }
  0x67   :  { %204 = vbcast.lane.b32.xlu1 %v194_v21, 272 }
  0x68   :  { %234 = vbcast.lane.b32.xlu0 %v232_v35, 256 }
  0x6b   :  { %238 = vbcast.lane.b32.xlu1 %v232_v35, 264 }
  0x6c   :  { %383 = vbcast.lane.b32.xlu0 %v373_v22, 272 }
  0x6f   :  { %402 = vbcast.lane.b32.xlu1 %v392_v23, 272 }
  0x70   :  { %432 = vbcast.lane.b32.xlu0 %v430_v36, 256 }
  0x73   :  { %436 = vbcast.lane.b32.xlu1 %v430_v36, 264 }
  0x74   :  { %459 = vbcast.lane.b32.xlu0 %v449_v24, 272 }
  0x77   :  { %478 = vbcast.lane.b32.xlu1 %v468_v25, 272 }
  0x78   :  { %508 = vbcast.lane.b32.xlu0 %v506_v37, 256 }
  0x7b   :  { %512 = vbcast.lane.b32.xlu1 %v506_v37, 264 }
  0x7c   :  { %147 = vbcast.lane.b32.xlu0 %v137_v27, 272 }
  0x7f   :  { %223 = vbcast.lane.b32.xlu1 %v213_v29, 272 }
  0x80   :  { %421 = vbcast.lane.b32.xlu0 %v411_v30, 272 }
  0x83   :  { %497 = vbcast.lane.b32.xlu1 %v487_v31, 272 }
  0x84   :  { %113 = vbcast.lane.b32.xlu0 %v893_v15, 280 }
  0x87   :  { %132 = vbcast.lane.b32.xlu1 %v897_v17, 280 }
  0x88   :  { %166 = vbcast.lane.b32.xlu0 %v156_v33, 272 }
  0x8b   :  { %189 = vbcast.lane.b32.xlu1 %v175_v19, 280 }
  0x8c   :  { %208 = vbcast.lane.b32.xlu0 %v194_v21, 280 }
  0x8f   :  { %242 = vbcast.lane.b32.xlu1 %v232_v35, 272 }
  0x90   :  { %387 = vbcast.lane.b32.xlu0 %v373_v22, 280 }
  0x93   :  { %406 = vbcast.lane.b32.xlu1 %v392_v23, 280 }
  0x94   :  { %440 = vbcast.lane.b32.xlu0 %v430_v36, 272 }
  0x97   :  { %463 = vbcast.lane.b32.xlu1 %v449_v24, 280 }
  0x98   :  { %482 = vbcast.lane.b32.xlu0 %v468_v25, 280 }
  0x9b   :  { %516 = vbcast.lane.b32.xlu1 %v506_v37, 272 }
  0x9c   :  { %151 = vbcast.lane.b32.xlu0 %v137_v27, 280 }
  0x9f   :  { %v61_v38 = vpop.xlane.xlu1 %60  ;;  %v40_v39 = vpop.xlane.xlu0 %39  ;;  %227 = vbcast.lane.b32.xlu1 %v213_v29, 280 }
  0xa0   :  { %v62_v40 = vrot.slane %v61_v38, 4  ;;  %v41_v41 = vrot.slane %v40_v39, 4  ;;  %425 = vbcast.lane.b32.xlu0 %v411_v30, 280 }
  0xa2   :  { %v63_v42 = vmin.f32 %v61_v38, %v62_v40  ;;  %v42_v43 = vmin.f32 %v40_v39, %v41_v41 }
  0xa3   :  { %v71_v44 = vpop.xlane.xlu1 %70  ;;  %v50_v45 = vpop.xlane.xlu0 %49  ;;  %501 = vbcast.lane.b32.xlu1 %v487_v31, 280 }
  0xa4   :  { %v64_v46 = vrot.slane %v63_v42, 2  ;;  %v43_v47 = vrot.slane %v42_v43, 2  ;;  %v72_v48 = vrot.slane %v71_v44, 4  ;;  %v51_v49 = vrot.slane %v50_v45, 4  ;;  %170 = vbcast.lane.b32.xlu0 %v156_v33, 280 }
  0xa5   :  { %v978_v33 = vand.u32 127, %v79_v12 }
  0xa6   :  { %v73_v50 = vmax.f32 %v71_v44, %v72_v48  ;;  %v52_v51 = vmax.f32 %v50_v45, %v51_v49  ;;  %v44_v52 = vmin.f32 %v42_v43, %v43_v47  ;;  %v65_v55 = vmin.f32 %v63_v42, %v64_v46 }
  0xa7   :  { %v921_v53 = vpop.permute.xlu1 %105  ;;  %v923_v54 = vpop.permute.xlu0 %101  ;;  %246 = vbcast.lane.b32.xlu1 %v232_v35, 280 }
  0xa8   :  { %v74_v56 = vrot.slane %v73_v50, 2  ;;  %v53_v57 = vrot.slane %v52_v51, 2  ;;  %444 = vbcast.lane.b32.xlu0 %v430_v36, 280  ;;  %v45_v58 = vrot.slane %v44_v52, 1  ;;  %v66_v0 = vrot.slane %v65_v55, 1 }
  0xa9   :  { %v90_v36 = vcvt.s32.f32 %v978_v33 }
  0xaa   :  { %v46_v59 = vmin.f32 %v44_v52, %v45_v58  ;;  %v54_v60 = vmax.f32 %v52_v51, %v53_v57  ;;  %v75_v61 = vmax.f32 %v73_v50, %v74_v56  ;;  %v67_v7 = vmin.f32 %v65_v55, %v66_v0 }
  0xab   :  { %v925_v62 = vpop.permute.xlu1 %120  ;;  %v927_v63 = vpop.permute.xlu0 %177  ;;  %520 = vbcast.lane.b32.xlu1 %v506_v37, 280  ;;  %v866_v37 = vmov 1966171168   ;;  %v92_v45 = vmul.f32 0.01010101, %v90_v36 }
  0xac   :  { %803 = vpush %v46_v59  ;;  %v55_v1 = vrot.slane %v54_v60, 1  ;;  %v76_v2 = vrot.slane %v75_v61, 1  ;;  %v251_v38 = vunpack.c.l.s4 %v866_v37 }
  0xae   :  { %v56_v3 = vmax.f32 %v54_v60, %v55_v1  ;;  %v77_v4 = vmax.f32 %v75_v61, %v76_v2  ;;  %v252_v46 = vunpack.c.0.s8 %v251_v38 }
  0xaf   :  { %v929_v5 = vpop.permute.xlu1 %124  ;;  %v931_v6 = vpop.permute.xlu0 %196 }
  0xb0   :  { %805 = vpush %v56_v3  ;;  %v255_v52 = vsub.s32 %v252_v46, %v887_v13 }
  0xb1   :  { %807 = vpush %v67_v7 }
  0xb2   :  { %809 = vpush %v77_v4 }
  0xb3   :  { %v933_v8 = vpop.permute.xlu1 %181  ;;  %v935_v9 = vpop.permute.xlu0 %375 }
  0xb7   :  { %v937_v10 = vpop.permute.xlu1 %200  ;;  %v939_v11 = vpop.permute.xlu0 %394 }
  0xbb   :  { %v941_v15 = vpop.permute.xlu1 %379  ;;  %v943_v16 = vpop.permute.xlu0 %451 }
  0xbf   :  { %v945_v17 = vpop.permute.xlu1 %398  ;;  %v947_v18 = vpop.permute.xlu0 %470 }
  0xc3   :  { %v949_v19 = vpop.permute.xlu1 %455  ;;  %v951_v20 = vpop.permute.xlu0 %139 }
  0xc7   :  { %v953_v21 = vpop.permute.xlu1 %474  ;;  %v955_v22 = vpop.permute.xlu0 %215 }
  0xcb   :  { %v957_v23 = vpop.permute.xlu1 %143  ;;  %v959_v24 = vpop.permute.xlu0 %413 }
  0xcf   :  { %v961_v25 = vpop.permute.xlu1 %219  ;;  %v963_v26 = vpop.permute.xlu0 %489 }
  0xd3   :  { %v965_v27 = vpop.permute.xlu1 %417  ;;  %v967_v28 = vpop.permute.xlu0 %109 }
  0xd7   :  { %v969_v29 = vpop.permute.xlu1 %493  ;;  %v971_v30 = vpop.permute.xlu0 %158 }
  0xdb   :  { %v973_v31 = vpop.permute.xlu1 %128  ;;  %v975_v32 = vpop.permute.xlu0 %185 }
  0xdd   :  { %s804_s0 = spop %803 }
  0xde   :  { %v82_v40 = vstv %s804_s0 }
  0xdf   :  { %v980_v34 = vpop.permute.xlu1 %162  ;;  %v982_v35 = vpop.permute.xlu0 %234 }
  0xe1   :  { %s806_s13 = spop %805 }
  0xe2   :  { %v85_v39 = vstv %s806_s13  ;;  %s808_s14 = spop %807 }
  0xe3   :  { %v83_v41 = vstv %s808_s14  ;;  %s810_s15 = spop %809  ;;  %v986_v42 = vpop.permute.xlu1 %204  ;;  %v384_v12 = vpop.permute.xlu0 %383 }
  0xe4   :  { %v84_v43 = vsel %vm81_vm8, %v82_v40, %v83_v41  ;;  %v86_v44 = vstv %s810_s15 }
  0xe5   :  { %v87_v47 = vsel %vm81_vm8, %v85_v39, %v86_v44 }
  0xe6   :  { %v93_v48 = vsub.f32 %v87_v47, %v84_v43 }
  0xe7   :  { %v988_v49 = vpop.permute.xlu1 %238  ;;  %v433_v50 = vpop.permute.xlu0 %432 }
  0xe8   :  { %v94_v51 = vmul.f32 %v93_v48, %v92_v45 }
  0xea   :  { %v95_v55 = vadd.f32 %v94_v51, %v84_v43 }
  0xeb   :  { %v403_v56 = vpop.permute.xlu1 %402  ;;  %v991_v57 = vpop.permute.xlu0 %459 }
  0xec   :  { %v249_v58 = vcombine.high %v95_v55, %v95_v55  ;;  %v256_v59 = vrot.slane %v95_v55, %v255_v52 }
  0xee   :  { %v263_v60 = vrot.slane %v249_v58, %v255_v52  ;;  %v264_v61 = vcombine.high %v256_v59, %v256_v59  ;;  %v272_v0 = vrot.slane %v256_v59, %v255_v52 }
  0xef   :  { %v993_v1 = vpop.permute.xlu1 %436  ;;  %v995_v2 = vpop.permute.xlu0 %508 }
  0xf0   :  { %v286_v3 = vrot.slane %v264_v61, %v255_v52  ;;  %v998_v4 = vrot.slane %v272_v0, %v890_v14  ;;  %v265_v7 = vcombine.high %v263_v60, %v263_v60  ;;  %v1000_v36 = vrot.slane %v263_v60, %v255_v52 }
  0xf1   :  { %v294_v44 = vcombine.high %v272_v0, %v272_v0 }
  0xf2   :  { %v296_v13 = vcombine.high %v286_v3, %v286_v3  ;;  %v1003_v37 = vrot.slane %v286_v3, %v890_v14  ;;  %vm338_vm9 = vcmp.le.f32.partialorder %v923_v54, %v998_v4  ;;  %vm339_vm10 = vcmp.le.f32.partialorder %v921_v53, %v998_v4 }
  0xf3   :  { %v1007_v38 = vpop.permute.xlu1 %478  ;;  %v1009_v39 = vpop.permute.xlu0 %147  ;;  %vm340_vm11 = vcmp.le.f32.partialorder %v967_v28, %v998_v4  ;;  %vm522_vm12 = vcmp.gt.f32.partialorder %v935_v9, %v998_v4  ;;  %vm523_vm13 = vcmp.gt.f32.partialorder %v941_v15, %v998_v4  ;;  %vm524_vm14 = vcmp.gt.f32.partialorder %v384_v12, %v998_v4 }
  0xf4   :  { %v1012_v40 = vrot.slane %v296_v13, %v890_v14  ;;  %v1023_v54 = vrot.slane %v265_v7, %v255_v52  ;;  %v1027_v41 = vrot.slane %v1000_v36, %v890_v14  ;;  %vm554_vm15 = vmand %vm338_vm9, %vm522_vm12  ;;  %v867_v53 = vmov 0.0  }
  0xf5   :  { %vm555_vm2 = vmand %vm339_vm10, %vm523_vm13  ;;  %v771_v9 = vsel %vm554_vm15, 1.0, %v867_v53  ;;  %vm342_vm3 = vcmp.le.f32.partialorder %v925_v62, %v1003_v37  ;;  %vm343_vm5 = vcmp.le.f32.partialorder %v929_v5, %v1003_v37  ;;  %vm526_vm6 = vcmp.gt.f32.partialorder %v939_v11, %v1003_v37 }
  0xf6   :  { %vm350_vm0 = vcmp.le.f32.partialorder %v971_v30, %v1012_v40  ;;  %vm534_vm1 = vcmp.gt.f32.partialorder %v433_v50, %v1012_v40  ;;  %v772_v43 = vsel %vm555_vm2, 1.0, %v867_v53  ;;  %vm556_vm4 = vmand %vm340_vm11, %vm524_vm14  ;;  %vm527_vm7 = vcmp.gt.f32.partialorder %v945_v17, %v1003_v37 }
  0xf7   :  { %v1035_v15 = vpop.permute.xlu1 %512  ;;  %v1037_v12 = vpop.permute.xlu0 %421  ;;  %v650_v45 = vadd.f32 %v772_v43, %v771_v9  ;;  %vm1052_vm8 = vmand %vm350_vm0, %vm534_vm1  ;;  %vm344_vm9 = vcmp.le.f32.partialorder %v973_v31, %v1003_v37  ;;  %vm528_vm10 = vcmp.gt.f32.partialorder %v403_v56, %v1003_v37  ;;  %v1061_v5 = vrot.slane %v1023_v54, %v890_v14 }
  0xf8   :  { %v773_v11 = vsel %vm556_vm4, 1.0, %v867_v53  ;;  %vm558_vm11 = vmand %vm342_vm3, %vm526_vm6  ;;  %vm354_vm12 = vcmp.le.f32.partialorder %v927_v63, %v1027_v41  ;;  %vm538_vm13 = vcmp.gt.f32.partialorder %v943_v16, %v1027_v41  ;;  %vm355_vm15 = vcmp.le.f32.partialorder %v933_v8, %v1027_v41 }
  0xf9   :  { %v1071_v17 = vadd.f32 %v773_v11, %v650_v45  ;;  %vm559_vm14 = vmand %vm343_vm5, %vm527_vm7  ;;  %v775_v28 = vsel %vm558_vm11, 1.0, %v867_v53  ;;  %vm539_vm0 = vcmp.gt.f32.partialorder %v949_v19, %v1027_v41  ;;  %vm356_vm2 = vcmp.le.f32.partialorder %v975_v32, %v1027_v41 }
  0xfa   :  { %vm560_vm1 = vmand %vm344_vm9, %vm528_vm10  ;;  %v776_v31 = vsel %vm559_vm14, 1.0, %v867_v53  ;;  %vm540_vm3 = vcmp.gt.f32.partialorder %v991_v57, %v1027_v41  ;;  %v295_v16 = vcombine.high %v1000_v36, %v1000_v36  ;;  %vm351_vm5 = vcmp.le.f32.partialorder %v980_v34, %v1012_v40 }
  0xfb   :  { %v1078_v30 = vpop.permute.xlu1 %223  ;;  %v1080_v62 = vpop.permute.xlu0 %113  ;;  %v659_v47 = vadd.f32 %v776_v31, %v775_v28  ;;  %vm570_vm4 = vmand %vm354_vm12, %vm538_vm13  ;;  %vm535_vm6 = vcmp.gt.f32.partialorder %v993_v1, %v1012_v40  ;;  %v1097_v48 = vrot.slane %v294_v44, %v890_v14  ;;  %v783_v32 = vsel %vm1052_vm8, 1.0, %v867_v53 }
  0xfc   :  { %v777_v50 = vsel %vm560_vm1, 1.0, %v867_v53  ;;  %vm571_vm7 = vmand %vm355_vm15, %vm539_vm0  ;;  %v787_v63 = vsel %vm570_vm4, 1.0, %v867_v53  ;;  %vm358_vm10 = vcmp.le.f32.partialorder %v931_v6, %v1061_v5  ;;  %vm542_vm8 = vcmp.gt.f32.partialorder %v947_v18, %v1061_v5 }
  0xfd   :  { %v1110_v51 = vadd.f32 %v777_v50, %v659_v47  ;;  %v788_v52 = vsel %vm571_vm7, 1.0, %v867_v53  ;;  %vm572_vm9 = vmand %vm356_vm2, %vm540_vm3  ;;  %vm359_vm12 = vcmp.le.f32.partialorder %v937_v10, %v1061_v5  ;;  %vm543_vm13 = vcmp.gt.f32.partialorder %v953_v21, %v1061_v5 }
  0xfe   :  { %v686_v56 = vadd.f32 %v788_v52, %v787_v63  ;;  %vm567_vm11 = vmand %vm351_vm5, %vm535_vm6  ;;  %vm360_vm14 = vcmp.le.f32.partialorder %v986_v42, %v1061_v5  ;;  %v789_v8 = vsel %vm572_vm9, 1.0, %v867_v53  ;;  %vm544_vm15 = vcmp.gt.f32.partialorder %v1007_v38, %v1061_v5 }
  0xff   :  { %v1117_v55 = vpop.permute.xlu1 %497  ;;  %v1119_v19 = vpop.permute.xlu0 %166  ;;  %v784_v18 = vsel %vm567_vm11, 1.0, %v867_v53  ;;  %v1135_v57 = vrot.slane %v295_v16, %v890_v14  ;;  %vm574_vm0 = vmand %vm358_vm10, %vm542_vm8  ;;  %vm346_vm2 = vcmp.le.f32.partialorder %v951_v20, %v1097_v48  ;;  %vm530_vm3 = vcmp.gt.f32.partialorder %v959_v24, %v1097_v48 }
 0x100   :  { %v1137_v34 = vadd.f32 %v789_v8, %v686_v56  ;;  %v1139_v58 = vadd.f32 %v784_v18, %v783_v32  ;;  %vm575_vm1 = vmand %vm359_vm12, %vm543_vm13  ;;  %v791_v10 = vsel %vm574_vm0, 1.0, %v867_v53  ;;  %vm347_vm5 = vcmp.le.f32.partialorder %v957_v23, %v1097_v48 }
 0x101   :  { %vm576_vm4 = vmand %vm360_vm14, %vm544_vm15  ;;  %v792_v59 = vsel %vm575_vm1, 1.0, %v867_v53  ;;  %vm531_vm6 = vcmp.gt.f32.partialorder %v965_v27, %v1097_v48  ;;  %vm362_vm9 = vcmp.le.f32.partialorder %v955_v22, %v1135_v57  ;;  %vm546_vm10 = vcmp.gt.f32.partialorder %v963_v26, %v1135_v57 }
 0x102   :  { %v695_v6 = vadd.f32 %v792_v59, %v791_v10  ;;  %v793_v60 = vsel %vm576_vm4, 1.0, %v867_v53  ;;  %vm562_vm7 = vmand %vm346_vm2, %vm530_vm3  ;;  %vm363_vm11 = vcmp.le.f32.partialorder %v961_v25, %v1135_v57  ;;  %vm547_vm12 = vcmp.gt.f32.partialorder %v969_v29, %v1135_v57 }
 0x103   :  { %v133_v21 = vpop.permute.xlu1 %132  ;;  %v209_v42 = vpop.permute.xlu0 %208  ;;  %vm563_vm8 = vmand %vm347_vm5, %vm531_vm6  ;;  %v779_v24 = vsel %vm562_vm7, 1.0, %v867_v53  ;;  %vm341_vm0 = vcmp.le.f32.partialorder %v1080_v62, %v998_v4  ;;  %vm532_vm5 = vcmp.gt.f32.partialorder %v1037_v12, %v1097_v48  ;;  %v297_v43 = vcombine.high %v1023_v54, %v1023_v54 }
 0x104   :  { %v696_v20 = vadd.f32 %v793_v60, %v695_v6  ;;  %v780_v61 = vsel %vm563_vm8, 1.0, %v867_v53  ;;  %vm578_vm13 = vmand %vm362_vm9, %vm546_vm10  ;;  %vm345_vm2 = vcmp.le.f32.partialorder %v133_v21, %v1003_v37  ;;  %vm361_vm6 = vcmp.le.f32.partialorder %v209_v42, %v1061_v5 }
 0x105   :  { %v668_v0 = vadd.f32 %v780_v61, %v779_v24  ;;  %vm579_vm15 = vmand %vm363_vm11, %vm547_vm12  ;;  %v795_v22 = vsel %vm578_vm13, 1.0, %v867_v53  ;;  %vm348_vm10 = vcmp.le.f32.partialorder %v1009_v39, %v1097_v48 }
 0x106   :  { %v796_v26 = vsel %vm579_vm15, 1.0, %v867_v53  ;;  %vm564_vm8 = vmand %vm348_vm10, %vm532_vm5  ;;  %vm364_vm15 = vcmp.le.f32.partialorder %v1078_v30, %v1135_v57 }
 0x107   :  { %v190_v23 = vpop.permute.xlu1 %189  ;;  %v388_v27 = vpop.permute.xlu0 %387  ;;  %v1172_v29 = vadd.f32 %v796_v26, %v795_v22  ;;  %v781_v28 = vsel %vm564_vm8, 1.0, %v867_v53 }
 0x108   :  { %vm525_vm14 = vcmp.gt.f32.partialorder %v388_v27, %v998_v4  ;;  %vm357_vm11 = vcmp.le.f32.partialorder %v190_v23, %v1027_v41  ;;  %v669_v63 = vadd.f32 %v781_v28, %v668_v0 }
 0x109   :  { %vm557_vm1 = vmand %vm341_vm0, %vm525_vm14  ;;  %vm548_vm14 = vcmp.gt.f32.partialorder %v1117_v55, %v1135_v57 }
 0x10a   :  { %v774_v3 = vsel %vm557_vm1, 1.0, %v867_v53 }
 0x10b   :  { %v1170_v25 = vpop.permute.xlu1 %242  ;;  %v441_v1 = vpop.permute.xlu0 %440  ;;  %v652_v7 = vadd.f32 %v774_v3, %v1071_v17  ;;  %v1195_v17 = vrot.slane %v297_v43, %v890_v14 }
 0x10c   :  { %vm536_vm0 = vcmp.gt.f32.partialorder %v441_v1, %v1012_v40 }
 0x10d   :  { %v653_v38 = vrot.slane %v652_v7, 4  ;;  %vm550_vm10 = vcmp.gt.f32.partialorder %v995_v2, %v1195_v17  ;;  %vm551_vm8 = vcmp.gt.f32.partialorder %v1035_v15, %v1195_v17 }
 0x10f   :  { %v407_v36 = vpop.permute.xlu1 %406  ;;  %v483_v13 = vpop.permute.xlu0 %482  ;;  %v654_v4 = vadd.f32 %v653_v38, %v652_v7 }
 0x110   :  { %vm529_vm3 = vcmp.gt.f32.partialorder %v407_v36, %v1003_v37  ;;  %vm545_vm4 = vcmp.gt.f32.partialorder %v483_v13, %v1061_v5 }
 0x111   :  { %vm561_vm7 = vmand %vm345_vm2, %vm529_vm3  ;;  %v655_v54 = vrot.slane %v654_v4, 2 }
 0x112   :  { %v778_v9 = vsel %vm561_vm7, 1.0, %v867_v53  ;;  %vm577_vm9 = vmand %vm361_vm6, %vm545_vm4  ;;  %vm352_vm4 = vcmp.le.f32.partialorder %v1119_v19, %v1012_v40  ;;  %vm367_vm6 = vcmp.le.f32.partialorder %v988_v49, %v1195_v17 }
 0x113   :  { %v661_v37 = vadd.f32 %v778_v9, %v1110_v51  ;;  %v794_v44 = vsel %vm577_vm9, 1.0, %v867_v53  ;;  %v464_v45 = vpop.permute.xlu1 %463  ;;  %v152_v46 = vpop.permute.xlu0 %151  ;;  %vm1203_vm2 = vmand %vm364_vm15, %vm548_vm14  ;;  %v656_v51 = vadd.f32 %v655_v54, %v654_v4  ;;  %vm366_vm9 = vcmp.le.f32.partialorder %v982_v35, %v1195_v17 }
 0x114   :  { %v697_v12 = vadd.f32 %v794_v44, %v696_v20  ;;  %vm541_vm12 = vcmp.gt.f32.partialorder %v464_v45, %v1027_v41  ;;  %vm349_vm3 = vcmp.le.f32.partialorder %v152_v46, %v1097_v48  ;;  %vm568_vm7 = vmand %vm352_vm4, %vm536_vm0 }
 0x115   :  { %v662_v5 = vrot.slane %v661_v37, 4  ;;  %vm573_vm13 = vmand %vm357_vm11, %vm541_vm12  ;;  %v657_v42 = vrot.slane %v656_v51, 1  ;;  %v785_v59 = vsel %vm568_vm7, 1.0, %v867_v53 }
 0x116   :  { %v698_v11 = vrot.slane %v697_v12, 4  ;;  %v790_v39 = vsel %vm573_vm13, 1.0, %v867_v53  ;;  %vm1223_vm11 = vmand %vm366_vm9, %vm550_vm10  ;;  %v678_v15 = vadd.f32 %v785_v59, %v1139_v58 }
 0x117   :  { %v663_v62 = vadd.f32 %v662_v5, %v661_v37  ;;  %v688_v31 = vadd.f32 %v790_v39, %v1137_v34  ;;  %v517_v16 = vpop.permute.xlu1 %516  ;;  %v426_v47 = vpop.permute.xlu0 %425  ;;  %v797_v34 = vsel %vm1203_vm2, 1.0, %v867_v53  ;;  %vm1235_vm14 = vmand %vm367_vm6, %vm551_vm8  ;;  %v658_v49 = vadd.f32 %v657_v42, %v656_v51 }
 0x118   :  { %v699_v41 = vadd.f32 %v698_v11, %v697_v12  ;;  %vm533_vm1 = vcmp.gt.f32.partialorder %v426_v47, %v1097_v48  ;;  %vm552_vm12 = vcmp.gt.f32.partialorder %v517_v16, %v1195_v17  ;;  %v705_v22 = vadd.f32 %v797_v34, %v1172_v29 }
 0x119   :  { %v664_v14 = vrot.slane %v663_v62, 2  ;;  %v689_v50 = vrot.slane %v688_v31, 4  ;;  %vm565_vm5 = vmand %vm349_vm3, %vm533_vm1  ;;  %vm368_vm1 = vcmp.le.f32.partialorder %v1170_v25, %v1195_v17  ;;  %vm733_vm6 = vcmask 1041409  }
 0x11a   :  { %v700_v52 = vrot.slane %v699_v41, 2  ;;  %v782_v56 = vsel %vm565_vm5, 1.0, %v867_v53  ;;  %vm584_vm5 = vmand %vm368_vm1, %vm552_vm12  ;;  %v799_v4 = vsel %vm1223_vm11, 1.0, %v867_v53  ;;  %vm735_vm8 = vcmask 1042434  }
 0x11b   :  { %v665_v30 = vadd.f32 %v664_v14, %v663_v62  ;;  %v690_v55 = vadd.f32 %v689_v50, %v688_v31  ;;  %v228_v8 = vpop.permute.xlu1 %227  ;;  %v171_v18 = vpop.permute.xlu0 %170  ;;  %v670_v19 = vadd.f32 %v782_v56, %v669_v63  ;;  %v801_v9 = vsel %vm584_vm5, 1.0, %v867_v53 }
 0x11c   :  { %v701_v48 = vadd.f32 %v700_v52, %v699_v41  ;;  %vm365_vm13 = vcmp.le.f32.partialorder %v228_v8, %v1135_v57  ;;  %vm353_vm2 = vcmp.le.f32.partialorder %v171_v18, %v1012_v40  ;;  %vm737_vm11 = vcmask 1043459  }
 0x11d   :  { %v666_v10 = vrot.slane %v665_v30, 1  ;;  %v691_v21 = vrot.slane %v690_v55, 2  ;;  %v671_v60 = vrot.slane %v670_v19, 4  ;;  %vm722_vm12 = vcmp.lt.s32.totalorder %v978_v33, 100 }
 0x11e   :  { %v702_v6 = vrot.slane %v701_v48, 1 }
 0x11f   :  { %v667_v2 = vadd.f32 %v666_v10, %v665_v30  ;;  %v692_v20 = vadd.f32 %v691_v21, %v690_v55  ;;  %v502_v24 = vpop.permute.xlu1 %501  ;;  %v445_v23 = vpop.permute.xlu0 %444  ;;  %v672_v0 = vadd.f32 %v671_v60, %v670_v19 }
 0x120   :  { %v703_v61 = vadd.f32 %v702_v6, %v701_v48  ;;  %vm549_vm15 = vcmp.gt.f32.partialorder %v502_v24, %v1135_v57  ;;  %vm537_vm0 = vcmp.gt.f32.partialorder %v445_v23, %v1012_v40  ;;  %v800_v40 = vsel %vm1235_vm14, 1.0, %v867_v53 }
 0x121   :  { %v693_v26 = vrot.slane %v692_v20, 1  ;;  %vm581_vm3 = vmand %vm365_vm13, %vm549_vm15  ;;  %v673_v57 = vrot.slane %v672_v0, 2  ;;  %v713_v37 = vadd.f32 %v800_v40, %v799_v4  ;;  %vm742_vm13 = vcmask 1043456  }
 0x122   :  { %v724_v1 = vsub.f32 %v667_v2, %v703_v61  ;;  %v798_v3 = vsel %vm581_vm3, 1.0, %v867_v53  ;;  %vm569_vm4 = vmand %vm353_vm2, %vm537_vm0  ;;  %vm754_vm14 = vcmask 0  }
 0x123   :  { %v694_v7 = vadd.f32 %v693_v26, %v692_v20  ;;  %v706_v29 = vadd.f32 %v798_v3, %v705_v22  ;;  %v786_v36 = vsel %vm569_vm4, 1.0, %v867_v53  ;;  %v247_v25 = vpop.permute.xlu1 %246  ;;  %v674_v44 = vadd.f32 %v673_v57, %v672_v0 }
 0x124   :  { %v679_v13 = vadd.f32 %v786_v36, %v678_v15  ;;  %vm369_vm7 = vcmp.le.f32.partialorder %v247_v25, %v1195_v17  ;;  %v714_v54 = vadd.f32 %v801_v9, %v713_v37 }
 0x125   :  { %v723_v58 = vsub.f32 %v658_v49, %v694_v7  ;;  %v707_v38 = vrot.slane %v706_v29, 4  ;;  %v675_v28 = vrot.slane %v674_v44, 1 }
 0x126   :  { %v680_v43 = vrot.slane %v679_v13, 4 }
 0x127   :  { %v708_v45 = vadd.f32 %v707_v38, %v706_v29  ;;  %v521_v46 = vpop.permute.xlu1 %520  ;;  %v734_v12 = vsel %vm733_vm6, %v724_v1, %v723_v58  ;;  %v676_v32 = vadd.f32 %v675_v28, %v674_v44 }
 0x128   :  { %v681_v5 = vadd.f32 %v680_v43, %v679_v13  ;;  %vm553_vm9 = vcmp.gt.f32.partialorder %v521_v46, %v1195_v17 }
 0x129   :  { %v709_v11 = vrot.slane %v708_v45, 2  ;;  %vm585_vm10 = vmand %vm369_vm7, %vm553_vm9 }
 0x12a   :  { %v802_v39 = vsel %vm585_vm10, 1.0, %v867_v53  ;;  %v682_v31 = vrot.slane %v681_v5, 2 }
 0x12b   :  { %v710_v62 = vadd.f32 %v709_v11, %v708_v45  ;;  %v715_v16 = vadd.f32 %v802_v39, %v714_v54 }
 0x12c   :  { %v683_v50 = vadd.f32 %v682_v31, %v681_v5 }
 0x12d   :  { %v711_v47 = vrot.slane %v710_v62, 1  ;;  %v716_v41 = vrot.slane %v715_v16, 4 }
 0x12e   :  { %v684_v30 = vrot.slane %v683_v50, 1 }
 0x12f   :  { %v712_v14 = vadd.f32 %v711_v47, %v710_v62  ;;  %v717_v63 = vadd.f32 %v716_v41, %v715_v16 }
 0x130   :  { %v685_v8 = vadd.f32 %v684_v30, %v683_v50 }
 0x131   :  { %v718_v51 = vrot.slane %v717_v63, 2  ;;  %v725_v52 = vsub.f32 %v676_v32, %v712_v14 }
 0x133   :  { %v719_v17 = vadd.f32 %v718_v51, %v717_v63  ;;  %v736_v55 = vsel %vm735_vm8, %v725_v52, %v734_v12 }
 0x135   :  { %v720_v56 = vrot.slane %v719_v17, 1 }
 0x137   :  { %v721_v18 = vadd.f32 %v720_v56, %v719_v17 }
 0x139   :  { %v726_v53 = vsub.f32 %v685_v8, %v721_v18 }
 0x13b   :  { %v738_v48 = vsel %vm737_vm11, %v726_v53, %v736_v55 }
 0x13c   :  { %v740_v19 = vsel %vm722_vm12, %v738_v48, 0.0 }
 0x13d   :  { %v741_v34 = vmul.f32 %v740_v19, %v740_v19 }
 0x13f   :  { %v743_v10 = vsel %vm742_vm13, %v741_v34, 0.0 }
 0x140   :  { %744 = vadd.xlane.f32.xlu0 %v743_v10 }
 0x1c9   :  { %v745_v21 = vpop.xlane.xlu0 %744 }
 0x1ca   :  { %v746_v42 = vrot.slane %v745_v21, 4 }
 0x1cc   :  { %v747_v59 = vadd.f32 %v746_v42, %v745_v21 }
 0x1ce   :  { %v748_v6 = vrot.slane %v747_v59, 2 }
 0x1d0   :  { %v749_v60 = vadd.f32 %v748_v6, %v747_v59 }
 0x1d2   :  { %v750_v35 = vrot.slane %v749_v60, 1 }
 0x1d4   :  { %v751_v2 = vadd.f32 %v750_v35, %v749_v60 }
 0x1d6   :  { %811 = vpush %v751_v2 }
 0x207   :  { %s812_s18 = spop %811 }
 0x208   :  { %v753_v33 = vstv %s812_s18 }
 0x209   :  { %755 = vst.msk [vmem:[#allocation5] sm:$0x1] %vm754_vm14, %v753_v33 }
 0x20a   :  { %850 = shalt.err (!%p847_p9)
}
 0x20b   :  { %765 = dma.vmem_to_hbm [thread:$0]  %s763_s17, 16, %s1265_s1, [#allocation4]  }
 0x20c   :  { %861 = dma.done.wait [#allocation4], 16  }
 0x20d   :  { %862 = vsyncadd [#allocation4], 4294967280 }
 0x20e   :  { %769 = vsyncpa [#allocation3], 1 }
 0x20f   :  { %770 = vsyncpa [#allocation4], 1 }

</bundles_post_ra>
